<compile_context>
chip_gen: v7x
topology: tpu7x:2x2x1
jax: 0.10.0
libtpu: 0.0.40
codegen_flags: <defaults>
</compile_context>

<pallas_src>
import functools

import jax
import jax.numpy as jnp
from jax import lax
from jax.experimental import pallas as pl
from jax.experimental.pallas import tpu as pltpu

HIDDEN = 64
_DEFAULT_MAX_TILE = 4096                    # review: 2048-8192 sweet spot
_VMEM_PIPELINE_BUDGET = 20 * 1024 * 1024    # conservative across v5e/v6e/v7x
_VMEM_LIMIT_BYTES = 32 * 1024 * 1024        # scoped-VMEM limit (fits v7x 64 MiB)


def _round_up(x, m):
    return ((x + m - 1) // m) * m


def _select_tile(B, obs_dim, itemsize, max_tile):
    """Batch-tile selection.

    * small batches: one whole-batch tile (per-call overhead dominates anyway)
    * otherwise: tile is a multiple of 128 (lane-dense output blocks), sized
      against a conservative VMEM budget (double-buffered obs + f32 temps) and
      capped at ceil(B/2) so the 'parallel' batch axis always has >= 2 steps
      (megacore sharding on v7x; harmless on v5e/v6e).
    """
    B8 = _round_up(B, 8)
    if B8 <= 256:
        return B8, 1
    # per-row VMEM: double-buffered obs tile + f32 h1/h2/head temporaries +
    # double-buffered (1, tb) output block.
    per_row = 2 * obs_dim * itemsize + 3 * HIDDEN * 4 + 8 * 4 + 2 * 4
    tb_vmem = max(128, (_VMEM_PIPELINE_BUDGET // per_row) // 128 * 128)
    tb_half = _round_up(pl.cdiv(B, 2), 128)     # guarantee >= 2 grid steps
    tb = max(128, min(_round_up(max_tile, 128), tb_vmem, tb_half))
    return tb, pl.cdiv(B, tb)


def _mlp_kernel(x_ref, w1_ref, b1_ref, w2_ref, b2_ref, w3_ref, b3_ref, o_ref):
    wdt = w1_ref.dtype
    x = x_ref[...].astype(wdt)                                  # (tb, obs_dim)
    h1 = jnp.dot(x, w1_ref[...], preferred_element_type=jnp.float32) + b1_ref[...]
    h1 = jnp.maximum(h1, 0.0).astype(wdt)                       # (tb, 64)
    h2 = jnp.dot(h1, w2_ref[...], preferred_element_type=jnp.float32) + b2_ref[...]
    h2 = jnp.maximum(h2, 0.0).astype(wdt)                       # (tb, 64)
    # Final Linear(64 -> 1), lane-dense: replicated w3 rows (8, 64) contracted
    # against h2's feature axis -> (8, tb) on the MXU.  Only row 0 is stored,
    # so the 8x replication never touches HBM.
    head = lax.dot_general(
        w3_ref[...], h2,
        dimension_numbers=(((1,), (1,)), ((), ())),
        preferred_element_type=jnp.float32,
    )                                                           # (8, tb)
    o_ref[...] = (head[0:1, :] + b3_ref[0, 0]).astype(o_ref.dtype)


@functools.partial(jax.jit, static_argnames=("max_tile",))
def random_scalar_network(obs, params, *, max_tile=_DEFAULT_MAX_TILE):
    """Forward pass of RandomScalarNetwork via a batch-tiled Pallas kernel.

    obs: [B, obs_dim] float32 (or bfloat16 if the producer already emits bf16)
    params: output of `prepare_params` -- w1 [obs_dim,64], b1 [1,64],
            w2 [64,64], b2 [1,64], w3_rows [8,64], b3 [1,1].
    returns: [B, 1] float32
    """
    B, obs_dim = obs.shape
    w1, b1 = params["w1"], params["b1"]
    w2, b2 = params["w2"], params["b2"]
    w3_rows, b3 = params["w3_rows"], params["b3"]

    tb, n_steps = _select_tile(B, obs_dim, obs.dtype.itemsize, max_tile)
    # Only the (tiny, single-row) output carries the rounded batch; obs is
    # streamed unpadded -- the ragged trailing block reads a few OOB rows whose
    # outputs land in lanes >= B and are sliced off below.
    B_out = n_steps * tb

    flops = 2 * B_out * (obs_dim * HIDDEN + HIDDEN * HIDDEN + HIDDEN * 8)
    bytes_accessed = (
        obs.dtype.itemsize * B * obs_dim                           # obs stream
        + 4 * B_out                                                # 1-row output
        + w1.dtype.itemsize * (obs_dim * HIDDEN + HIDDEN * HIDDEN + 8 * HIDDEN)
        + 4 * (2 * HIDDEN + 1)                                     # biases
    )

    out = pl.pallas_call(
        _mlp_kernel,
        out_shape=jax.ShapeDtypeStruct((1, B_out), jnp.float32),
        grid=(n_steps,),
        in_specs=[
            pl.BlockSpec((tb, obs_dim), lambda i: (i, 0)),       # obs (streamed)
            pl.BlockSpec((obs_dim, HIDDEN), lambda i: (0, 0)),   # w1 (resident)
            pl.BlockSpec((1, HIDDEN), lambda i: (0, 0)),         # b1
            pl.BlockSpec((HIDDEN, HIDDEN), lambda i: (0, 0)),    # w2
            pl.BlockSpec((1, HIDDEN), lambda i: (0, 0)),         # b2
            pl.BlockSpec((8, HIDDEN), lambda i: (0, 0)),         # w3 rows
            pl.BlockSpec(memory_space=pltpu.MemorySpace.SMEM),   # b3 scalar
        ],
        out_specs=pl.BlockSpec((1, tb), lambda i: (0, i)),       # lane-dense row
        compiler_params=pltpu.CompilerParams(
            dimension_semantics=("parallel",),
            vmem_limit_bytes=_VMEM_LIMIT_BYTES),
        cost_estimate=pl.CostEstimate(
            flops=flops, transcendentals=0, bytes_accessed=bytes_accessed),
    )(obs, w1, b1, w2, b2, w3_rows, b3)

    return out[0, :B].reshape(B, 1)


def prepare_params(raw, *, weight_dtype=jnp.float32):
    """One-time parameter prep (hoisted out of the per-call path).

    Replicates the scalar-head row to an MXU-aligned (8, 64) operand, reshapes
    biases, and optionally casts weights for a bf16 HBM/MXU fast path
    (v6e/v7x).  Biases stay f32 (added after f32 accumulation).
    """
    return {
        "w1": raw["w1"].astype(weight_dtype),
        "b1": raw["b1"].reshape(1, HIDDEN).astype(jnp.float32),
        "w2": raw["w2"].astype(weight_dtype),
        "b2": raw["b2"].reshape(1, HIDDEN).astype(jnp.float32),
        "w3_rows": jnp.broadcast_to(
            raw["w3"].reshape(1, HIDDEN), (8, HIDDEN)).astype(weight_dtype),
        "b3": raw["b3"].reshape(1, 1).astype(jnp.float32),
    }


def init_params(key, obs_dim, hidden=HIDDEN):
    """Deterministic init matching nn.Linear shapes (U[-1/sqrt(fan_in), +])."""
    k1, k2, k3, k4, k5, k6 = jax.random.split(key, 6)

    def uinit(k, shape, fan_in):
        bound = 1.0 / jnp.sqrt(fan_in)
        return jax.random.uniform(k, shape, jnp.float32, -bound, bound)

    return {
        "w1": uinit(k1, (obs_dim, hidden), obs_dim),
        "b1": uinit(k2, (1, hidden), obs_dim),
        "w2": uinit(k3, (hidden, hidden), hidden),
        "b2": uinit(k4, (1, hidden), hidden),
        "w3": uinit(k5, (hidden, 1), hidden),
        "b3": uinit(k6, (1, 1), hidden),
    }


def _reference(obs, p):
    h1 = jnp.maximum(obs @ p["w1"] + p["b1"], 0.0)
    h2 = jnp.maximum(h1 @ p["w2"] + p["b2"], 0.0)
    return h2 @ p["w3"] + p["b3"]


if __name__ == "__main__":
    key = jax.random.PRNGKey(0)
    k_obs, k_obs2, k_obs3, k_params = jax.random.split(key, 4)

    B, OBS_DIM = 8, 32
    obs = jax.random.normal(k_obs, (B, OBS_DIM), jnp.float32)
    raw = init_params(k_params, OBS_DIM)
    params = prepare_params(raw)

    # Single whole-batch tile path (B=8).
    out = jax.block_until_ready(random_scalar_network(obs, params))
    ref = _reference(obs, raw)
    assert out.shape == (B, 1), out.shape
    assert jnp.allclose(out, ref, atol=1e-4, rtol=1e-4), "mismatch (B=8)"

    # Multi-tile path with a ragged trailing block (no wrapper-side padding).
    B2 = 300
    obs2 = jax.random.normal(k_obs2, (B2, OBS_DIM), jnp.float32)
    out2 = jax.block_until_ready(random_scalar_network(obs2, params, max_tile=128))
    ref2 = _reference(obs2, raw)
    assert out2.shape == (B2, 1), out2.shape
    assert jnp.allclose(out2, ref2, atol=1e-4, rtol=1e-4), "mismatch (B=300)"

    # Default large-tile path with >= 2 grid steps (megacore on v7x).
    B3 = 1000
    obs3 = jax.random.normal(k_obs3, (B3, OBS_DIM), jnp.float32)
    out3 = jax.block_until_ready(random_scalar_network(obs3, params))
    ref3 = _reference(obs3, raw)
    assert out3.shape == (B3, 1), out3.shape
    assert jnp.allclose(out3, ref3, atol=1e-4, rtol=1e-4), "mismatch (B=1000)"

    # Optional bf16 fast path (obs supplied in bf16 by the producer).
    params_bf16 = prepare_params(raw, weight_dtype=jnp.bfloat16)
    out_bf16 = jax.block_until_ready(
        random_scalar_network(obs3.astype(jnp.bfloat16), params_bf16))
    assert out_bf16.shape == (B3, 1), out_bf16.shape
    assert jnp.allclose(out_bf16, ref3, atol=5e-2, rtol=5e-2), "mismatch (bf16)"

    print("KERNEL_OK")
</pallas_src>

<mosaic_0001>
module attributes {stable_mosaic.version = 11 : i64} {
  func.func @_mlp_kernel(%arg0: i32, %arg1: memref<8x32xf32, #tpu.memory_space<vmem>>, %arg2: memref<32x64xf32, #tpu.memory_space<vmem>>, %arg3: memref<1x64xf32, #tpu.memory_space<vmem>>, %arg4: memref<64x64xf32, #tpu.memory_space<vmem>>, %arg5: memref<1x64xf32, #tpu.memory_space<vmem>>, %arg6: memref<8x64xf32, #tpu.memory_space<vmem>>, %arg7: memref<1x1xf32, #tpu.memory_space<smem>>, %arg8: memref<1x8xf32, #tpu.memory_space<vmem>>) attributes {dimension_semantics = [#tpu.dimension_semantics<parallel>], iteration_bounds = array<i64: 1>, scalar_prefetch = 0 : i64, scratch_operands = 0 : i64, tpu.core_type = #tpu.core_type<tc>, window_params = [{transform_indices = @transform_0, window_bounds = array<i64: 8, 32>}, {pipeline_mode = #tpu.pipeline_mode<synchronous>, transform_indices = @transform_1, window_bounds = array<i64: 32, 64>}, {pipeline_mode = #tpu.pipeline_mode<synchronous>, transform_indices = @transform_2, window_bounds = array<i64: 1, 64>}, {pipeline_mode = #tpu.pipeline_mode<synchronous>, transform_indices = @transform_3, window_bounds = array<i64: 64, 64>}, {pipeline_mode = #tpu.pipeline_mode<synchronous>, transform_indices = @transform_4, window_bounds = array<i64: 1, 64>}, {pipeline_mode = #tpu.pipeline_mode<synchronous>, transform_indices = @transform_5, window_bounds = array<i64: 8, 64>}, {transform_indices = @transform_6, window_bounds = array<i64: 1, 1>}, {transform_indices = @transform_7, window_bounds = array<i64: 1, 8>}]} {
    %c0 = arith.constant 0 : index
    %c0_0 = arith.constant 0 : index
    %0 = vector.load %arg1[%c0, %c0_0] : memref<8x32xf32, #tpu.memory_space<vmem>>, vector<8x32xf32>
    %c0_1 = arith.constant 0 : index
    %c0_2 = arith.constant 0 : index
    %1 = vector.load %arg2[%c0_1, %c0_2] : memref<32x64xf32, #tpu.memory_space<vmem>>, vector<32x64xf32>
    %cst = arith.constant dense<0.000000e+00> : vector<8x64xf32>
    %2 = tpu.matmul %0, %1, %cst {dimension_numbers = #tpu.dot_dimension_numbers<[1], [0], [0], [1], [0, 0, 1, 1], [], []>} : vector<8x32xf32>, vector<32x64xf32>, vector<8x64xf32> -> vector<8x64xf32>
    %c0_3 = arith.constant 0 : index
    %c0_4 = arith.constant 0 : index
    %3 = vector.load %arg3[%c0_3, %c0_4] : memref<1x64xf32, #tpu.memory_space<vmem>>, vector<1x64xf32>
    %4 = vector.broadcast %3 : vector<1x64xf32> to vector<8x64xf32>
    %5 = arith.addf %2, %4 : vector<8x64xf32>
    %cst_5 = arith.constant 0.000000e+00 : f32
    %6 = vector.broadcast %cst_5 : f32 to vector<8x64xf32>
    %7 = arith.maximumf %5, %6 : vector<8x64xf32>
    %c0_6 = arith.constant 0 : index
    %c0_7 = arith.constant 0 : index
    %8 = vector.load %arg4[%c0_6, %c0_7] : memref<64x64xf32, #tpu.memory_space<vmem>>, vector<64x64xf32>
    %cst_8 = arith.constant dense<0.000000e+00> : vector<8x64xf32>
    %9 = tpu.matmul %7, %8, %cst_8 {dimension_numbers = #tpu.dot_dimension_numbers<[1], [0], [0], [1], [0, 0, 1, 1], [], []>} : vector<8x64xf32>, vector<64x64xf32>, vector<8x64xf32> -> vector<8x64xf32>
    %c0_9 = arith.constant 0 : index
    %c0_10 = arith.constant 0 : index
    %10 = vector.load %arg5[%c0_9, %c0_10] : memref<1x64xf32, #tpu.memory_space<vmem>>, vector<1x64xf32>
    %11 = vector.broadcast %10 : vector<1x64xf32> to vector<8x64xf32>
    %12 = arith.addf %9, %11 : vector<8x64xf32>
    %cst_11 = arith.constant 0.000000e+00 : f32
    %13 = vector.broadcast %cst_11 : f32 to vector<8x64xf32>
    %14 = arith.maximumf %12, %13 : vector<8x64xf32>
    %c0_12 = arith.constant 0 : index
    %c0_13 = arith.constant 0 : index
    %15 = vector.load %arg6[%c0_12, %c0_13] : memref<8x64xf32, #tpu.memory_space<vmem>>, vector<8x64xf32>
    %cst_14 = arith.constant dense<0.000000e+00> : vector<8x8xf32>
    %16 = tpu.matmul %15, %14, %cst_14 {dimension_numbers = #tpu.dot_dimension_numbers<[1], [1], [0], [0], [0, 0, 1, 0], [], []>} : vector<8x64xf32>, vector<8x64xf32>, vector<8x8xf32> -> vector<8x8xf32>
    %17 = vector.extract_strided_slice %16 {offsets = [0, 0], sizes = [1, 8], strides = [1, 1]} : vector<8x8xf32> to vector<1x8xf32>
    %c0_15 = arith.constant 0 : index
    %c0_16 = arith.constant 0 : index
    %18 = memref.load %arg7[%c0_15, %c0_16] : memref<1x1xf32, #tpu.memory_space<smem>>
    %19 = vector.broadcast %18 : f32 to vector<1x8xf32>
    %20 = arith.addf %17, %19 : vector<1x8xf32>
    %c0_17 = arith.constant 0 : index
    %c0_18 = arith.constant 0 : index
    %21 = vector.load %arg8[%c0_17, %c0_18] : memref<1x8xf32, #tpu.memory_space<vmem>>, vector<1x8xf32>
    tpu.vector_store %arg8[%c0_17, %c0_18], %20 {strides = array<i32>} : memref<1x8xf32, #tpu.memory_space<vmem>>, vector<1x8xf32>,
    return
  }
  func.func @transform_0(%arg0: i32) -> (i32, i32) {
    %c0_i32 = arith.constant 0 : i32
    %c0_i32_0 = arith.constant 0 : i32
    return %arg0, %c0_i32 : i32, i32
  }
  func.func @transform_1(%arg0: i32) -> (i32, i32) {
    %c0_i32 = arith.constant 0 : i32
    %c0_i32_0 = arith.constant 0 : i32
    %c0_i32_1 = arith.constant 0 : i32
    return %c0_i32, %c0_i32_0 : i32, i32
  }
  func.func @transform_2(%arg0: i32) -> (i32, i32) {
    %c0_i32 = arith.constant 0 : i32
    %c0_i32_0 = arith.constant 0 : i32
    %c0_i32_1 = arith.constant 0 : i32
    return %c0_i32, %c0_i32_0 : i32, i32
  }
  func.func @transform_3(%arg0: i32) -> (i32, i32) {
    %c0_i32 = arith.constant 0 : i32
    %c0_i32_0 = arith.constant 0 : i32
    %c0_i32_1 = arith.constant 0 : i32
    return %c0_i32, %c0_i32_0 : i32, i32
  }
  func.func @transform_4(%arg0: i32) -> (i32, i32) {
    %c0_i32 = arith.constant 0 : i32
    %c0_i32_0 = arith.constant 0 : i32
    %c0_i32_1 = arith.constant 0 : i32
    return %c0_i32, %c0_i32_0 : i32, i32
  }
  func.func @transform_5(%arg0: i32) -> (i32, i32) {
    %c0_i32 = arith.constant 0 : i32
    %c0_i32_0 = arith.constant 0 : i32
    %c0_i32_1 = arith.constant 0 : i32
    return %c0_i32, %c0_i32_0 : i32, i32
  }
  func.func @transform_6(%arg0: i32) -> (i32, i32) {
    %c0_i32 = arith.constant 0 : i32
    %c0_i32_0 = arith.constant 0 : i32
    %c0_i32_1 = arith.constant 0 : i32
    return %c0_i32, %c0_i32_0 : i32, i32
  }
  func.func @transform_7(%arg0: i32) -> (i32, i32) {
    %c0_i32 = arith.constant 0 : i32
    %c0_i32_0 = arith.constant 0 : i32
    return %c0_i32, %arg0 : i32, i32
  }
}

</mosaic_0001>

<bundles_post_ra>
// kernel: random_scalar_network.1
= control target key start
LH: loop header
LB: loop body
LE: loop exit
PB: predicated region body
PF: predicated region fallthrough
CT: control target
= control target key end

     0   :  { %13 = vsyncpa [#allocation4], 0  ;;  %s638_s0 = inlined_call_operand.hbm [shape: f32[8,32], index: 0, kind: input, shape index: {}]   ;;  %s639_s1 = inlined_call_operand.hbm [shape: f32[32,64], index: 1, kind: input, shape index: {}]   ;;  %s640_s2 = inlined_call_operand.vmem [shape: f32[1,64], index: 2, kind: input, shape index: {}]   ;;  %s641_s3 = inlined_call_operand.hbm [shape: f32[64,64], index: 3, kind: input, shape index: {}]   ;;  %s642_s4 = inlined_call_operand.vmem [shape: f32[1,64], index: 4, kind: input, shape index: {}]   ;;  %s643_s5 = inlined_call_operand.vmem [shape: f32[8,64], index: 5, kind: input, shape index: {}]   ;;  %s644_s6 = inlined_call_operand.<no memory space> [shape: f32[1,1], index: 6, kind: input, shape index: {}]   ;;  %s645_s7 = inlined_call_operand.hbm [shape: f32[1,8], index: 7, kind: output, shape index: {}]  }
   0x1   :  { %14 = vsyncpa [#allocation7], 0 }
   0x2   :  { %15 = vsyncpa [#allocation5], 0  ;;  %s520_s24 = smov [#allocation6]   ;;  %s426_s28 = scalar_lea.hbm %s639_s1, 512 }
   0x3   :  { %s31_s25 = sshll.u32 %s520_s24, 4  ;;  %p427_p0 = scmp.ne.s32.totalorder %s639_s1, %s426_s28  ;;  %s32_s25 = int_to_ptr.vmem [resolvable:$true] %s31_s25 }
   0x4   :  { %p430_p1 = scmp.lt.u32.totalorder %s426_s28, %s639_s1 }
   0x6   :  { %p432_p2 = pnand %p430_p1, %p427_p0 }
   0x8   :  { %435 = shalt.err (!%p432_p2)
}
   0x9   :  { %s436_s10 = scalar_lea.vmem %s32_s25, 512  ;;  %p441_p4 = scmp.lt.s32.totalorder %s32_s25, %s32_s25 }
   0xa   :  { %p437_p3 = scmp.ne.s32.totalorder %s32_s25, %s436_s10  ;;  %p442_p5 = scmp.lt.s32.totalorder %s436_s10, %s436_s10 }
   0xc   :  { %p443_p6 = por %p442_p5, %p441_p4 }
   0xe   :  { %p444_p7 = pnand %p443_p6, %p437_p3 }
  0x10   :  { %447 = shalt.err (!%p444_p7)
}
  0x11   :  { %s521_s11 = smov 128   ;;  %s522_s12 = smov 8  }
  0x12   :  { %37 = dma.hbm_to_vmem [thread:$0]  %s639_s1, 512, %s32_s25, [#allocation7], %s521_s11, %s521_s11, %s522_s12  }
  0x13   :  { %s523_s15 = smov [#allocation3]   ;;  %s524_s17 = smov [#allocation8]  }
  0x14   :  { %s22_s16 = sshll.u32 %s523_s15, 4  ;;  %s45_s18 = sshll.u32 %s524_s17, 4  ;;  %s23_s16 = int_to_ptr.vmem [resolvable:$true] %s22_s16  ;;  %s46_s18 = int_to_ptr.vmem [resolvable:$true] %s45_s18 }
  0x15   :  { %s448_s21 = scalar_lea.hbm %s638_s0, 128 }
  0x16   :  { %p449_p8 = scmp.ne.s32.totalorder %s638_s0, %s448_s21  ;;  %p452_p9 = scmp.lt.u32.totalorder %s448_s21, %s638_s0 }
  0x18   :  { %p454_p10 = pnand %p452_p9, %p449_p8 }
  0x1a   :  { %457 = shalt.err (!%p454_p10)
}
  0x1b   :  { %s458_s1 = scalar_lea.vmem %s23_s16, 128  ;;  %p463_p12 = scmp.lt.s32.totalorder %s23_s16, %s23_s16 }
  0x1c   :  { %p459_p11 = scmp.ne.s32.totalorder %s23_s16, %s458_s1  ;;  %p464_p13 = scmp.lt.s32.totalorder %s458_s1, %s458_s1 }
  0x1e   :  { %p465_p0 = por %p464_p13, %p463_p12 }
  0x20   :  { %p466_p1 = pnand %p465_p0, %p459_p11 }
  0x22   :  { %469 = shalt.err (!%p466_p1)
}
  0x23   :  { %25 = dma.hbm_to_vmem [thread:$0]  %s638_s0, 128, %s23_s16, [#allocation4]  }
  0x24   :  { %s470_s30 = scalar_lea.hbm %s641_s3, 1024 }
  0x25   :  { %p471_p2 = scmp.ne.s32.totalorder %s641_s3, %s470_s30  ;;  %p474_p3 = scmp.lt.u32.totalorder %s470_s30, %s641_s3 }
  0x27   :  { %p476_p4 = pnand %p474_p3, %p471_p2 }
  0x29   :  { %479 = shalt.err (!%p476_p4)
}
  0x2a   :  { %s480_s14 = scalar_lea.vmem %s46_s18, 1024  ;;  %p485_p6 = scmp.lt.s32.totalorder %s46_s18, %s46_s18 }
  0x2b   :  { %p481_p5 = scmp.ne.s32.totalorder %s46_s18, %s480_s14  ;;  %p486_p7 = scmp.lt.s32.totalorder %s480_s14, %s480_s14 }
  0x2d   :  { %p487_p8 = por %p486_p7, %p485_p6 }
  0x2f   :  { %p488_p9 = pnand %p487_p8, %p481_p5 }
  0x31   :  { %491 = shalt.err (!%p488_p9)
}
  0x32   :  { %51 = dma.hbm_to_vmem [thread:$0]  %s641_s3, 1024, %s46_s18, [#allocation7], %s521_s11, %s521_s11, %s522_s12  }
  0x33   :  { %514 = dma.done.wait [#allocation4], 128  }
  0x34   :  { %515 = vsyncadd [#allocation4], 4294967168 }
  0x35   :  { %516 = dma.done.wait [#allocation7], 1536  }
  0x36   :  { %517 = vsyncadd [#allocation7], 4294965760  ;;  %v525_v0 = vmov 0.0|0.0   ;;  %vm526_vm0 = vmmov 0   ;;  %v527_v1 = vmov 0.0   ;;  %v68_v2 = vld [vmem:[#allocation6] sm:$0xff]  ;;  %v322_v32 = vstv %s644_s6 }
  0x37   :  { %399 = vmatprep.subr.bf16.mxu0 %v525_v0  ;;  %372 = vmatprep.mubr.msk.f32.mxu0 %vm526_vm0, %v527_v1  ;;  %v69_v3 = vld [vmem:[#allocation6 + $0x8] sm:$0xff]  ;;  %v70_v4 = vld [vmem:[#allocation6 + $0x10] sm:$0xff]  ;;  %v71_v6 = vld [vmem:[#allocation6 + $0x18] sm:$0xff]  ;;  %vm79_vm1 = vcmask 261120   ;;  %vm169_vm2 = vcmask 523264   ;;  %s528_s20 = smov [#allocation9]  }
  0x38   :  { %405 = vmatprep.subr.bf16.mxu1 %v525_v0  ;;  %391 = vmatprep.mubr.msk.f32.mxu1 %vm526_vm0, %v527_v1  ;;  %v400_v5 = vpack.c.bf16 %v69_v3, %v68_v2  ;;  %v154_v7 = vld [vmem:[#allocation8] sm:$0xff]  ;;  %v155_v8 = vld [vmem:[#allocation8 + $0x8] sm:$0xff]  ;;  %v156_v9 = vld [vmem:[#allocation8 + $0x10] sm:$0xff]  ;;  %v403_v11 = vpack.c.bf16 %v71_v6, %v70_v4  ;;  %s332_s21 = sshll.u32 %s528_s20, 4  ;;  %vm324_vm3 = vcmask 57344   ;;  %s333_s21 = int_to_ptr.vmem [resolvable:$true] %s332_s21 }
  0x39   :  { %v157_v10 = vld [vmem:[#allocation8 + $0x18] sm:$0xff]  ;;  %v406_v12 = vpack.c.bf16 %v155_v8, %v154_v7  ;;  %v158_v14 = vld [vmem:[#allocation8 + $0x20] sm:$0xff]  ;;  %v159_v15 = vld [vmem:[#allocation8 + $0x28] sm:$0xff]  ;;  %s496_s22 = scalar_lea.vmem %s333_s21, 32  ;;  %p497_p11 = scmp.lt.s32.totalorder %s333_s21, %s333_s21 }
  0x3a   :  { %401 = vmatpush3.bf16.msra.mxu0 %v400_v5  ;;  %v409_v13 = vpack.c.bf16 %v157_v10, %v156_v9  ;;  %v67_v16 = vld [vmem:[#allocation3] sm:$0xff]  ;;  %v412_v17 = vpack.c.bf16 %v159_v15, %v158_v14  ;;  %v160_v18 = vld [vmem:[#allocation8 + $0x30] sm:$0xff] }
  0x3b   :  { %402 = vmatprep.subr.bf16.mxu0 %v525_v0  ;;  %407 = vmatpush3.bf16.msra.mxu1 %v406_v12  ;;  %v161_v19 = vld [vmem:[#allocation8 + $0x38] sm:$0xff] }
  0x3c   :  { %408 = vmatprep.subr.bf16.mxu1 %v525_v0  ;;  %v415_v20 = vpack.c.bf16 %v161_v19, %v160_v18  ;;  %v342_v21 = vld [vmem:[%s640_s2] ss:$0 sm:$0xff] }
  0x3d   :  { %v344_v26 = vld [vmem:[%s642_s4] ss:$0 sm:$0xff]  ;;  %s492_s4 = scalar_lea.vmem %s333_s21, 16 }
  0x3e   :  { %404 = vmatpush3.bf16.msra.mxu0 %v403_v11  ;;  %v244_v31 = vld [vmem:[%s643_s5] sm:$0xff]  ;;  %p493_p10 = scmp.ne.s32.totalorder %s333_s21, %s492_s4  ;;  %p498_p12 = scmp.lt.s32.totalorder %s496_s22, %s492_s4 }
  0x3f   :  { %394 = vmatprep.subr.mxu0 %v527_v1  ;;  %410 = vmatpush3.bf16.msra.mxu1 %v409_v13 }
  0x40   :  { %411 = vmatprep.subr.bf16.mxu1 %v525_v0  ;;  %p499_p13 = por %p498_p12, %p497_p11 }
  0x41   :  { %373 = vmatmul.mubr.msk.f32.vlgmr.msra.gmra.mrb[0].mxu0 %vm79_vm1, %v67_v16 }
  0x42   :  { %396 = vmatprep.mubr.msk.f32.mxu0 %vm526_vm0, %v527_v1  ;;  %p500_p0 = pnand %p499_p13, %p493_p10 }
  0x43   :  { %413 = vmatpush3.bf16.msra.mxu1 %v412_v17 }
  0x44   :  { %414 = vmatprep.subr.bf16.mxu1 %v525_v0 }
  0x47   :  { %416 = vmatpush3.bf16.msra.mxu1 %v415_v20 }
 0x114   :  { %v149_v22 = vpop.f32.mrb[0].mxu0 }
 0x115   :  { %v150_v23 = vadd.f32 %v342_v21, %v149_v22  ;;  %v374_v24 = vpop.f32.mrb[1].mxu0 }
 0x117   :  { %v153_v25 = vmax.f32 %v150_v23, 0.0 }
 0x119   :  { %392 = vmatmul.mubr.msk.f32.vlgmr.msra.gmra.mrb[0].mxu1 %vm169_vm2, %v153_v25 }
 0x1ec   :  { %v239_v27 = vpop.f32.mrb[0].mxu1 }
 0x1ed   :  { %v240_v28 = vadd.f32 %v344_v26, %v239_v27  ;;  %v393_v29 = vpop.f32.mrb[1].mxu1 }
 0x1ef   :  { %v243_v30 = vmax.f32 %v240_v28, 0.0 }
 0x1f1   :  { %395 = vmatpush3.xpose.msk.msra.mxu0 %vm169_vm2, %v243_v30 }
 0x1f4   :  { %397 = vmatmul.mubr.msk.f32.vlgmr.msra.gmra.mrb[2].mxu0 %vm169_vm2, %v244_v31 }
 0x2c7   :  { %v317_v33 = vpop.f32.mrb[2].mxu0 }
 0x2c8   :  { %v323_v34 = vadd.f32 %v322_v32, %v317_v33  ;;  %v398_v35 = vpop.f32.mrb[3].mxu0 }
 0x2ca   :  { %325 = vst.msk [vmem:[#allocation9] sm:$0x1] %vm324_vm3, %v323_v34 }
 0x2cb   :  { %503 = shalt.err (!%p500_p0)
}
 0x2cc   :  { %s504_s6 = scalar_lea.hbm %s645_s7, 16 }
 0x2cd   :  { %p505_p1 = scmp.ne.s32.totalorder %s645_s7, %s504_s6  ;;  %p508_p2 = scmp.lt.u32.totalorder %s504_s6, %s645_s7 }
 0x2cf   :  { %p510_p3 = pnand %p508_p2, %p505_p1 }
 0x2d1   :  { %513 = shalt.err (!%p510_p3)
}
 0x2d2   :  { %335 = dma.vmem_to_hbm [thread:$0]  %s333_s21, 16, %s645_s7, [#allocation5]  }
 0x2d3   :  { %518 = dma.done.wait [#allocation5], 16  }
 0x2d4   :  { %519 = vsyncadd [#allocation5], 4294967280 }
 0x2d5   :  { %339 = vsyncpa [#allocation4], 1 }
 0x2d6   :  { %340 = vsyncpa [#allocation7], 1 }
 0x2d7   :  { %341 = vsyncpa [#allocation5], 1 }

</bundles_post_ra>
